<compile_context>
chip_gen: v6e
topology: v6e:2x2x1
jax: 0.10.0
libtpu: 0.0.40
codegen_flags: <defaults>
</compile_context>

<pallas_src>
import functools

import jax
import jax.numpy as jnp
from jax.experimental import pallas as pl
from jax.experimental.pallas import tpu as pltpu


def _out_mult_kernel(x_ref, s_ref, o_ref, *, compute_dtype):
    # x_ref, s_ref, o_ref: (bm, lanes) lane-dense tiles.
    x = x_ref[...].astype(compute_dtype)
    s = s_ref[...].astype(compute_dtype)
    o_ref[...] = jnp.sqrt(x * s).astype(o_ref.dtype)


def _device_kind():
    try:
        return jax.devices()[0].device_kind.lower()
    except Exception:
        return ""


# Widest lane-dense last dim first: fewer, wider stores / DMA descriptors.
_LANE_CANDIDATES = (4096, 2048, 1024, 512, 256, 128)


@functools.partial(jax.jit, static_argnames=("block_bytes", "min_pallas_bytes"))
def out_mult(x, scale_x, *, block_bytes=2 * 1024 * 1024, min_pallas_bytes=1 << 20):
    """Elementwise sqrt(x * scale_x) (PyTorch OutMult.forward). Any matching shape."""
    assert x.shape == scale_x.shape, "x and scale_x must have the same shape"
    orig_shape = x.shape
    out_dtype = jnp.promote_types(x.dtype, scale_x.dtype)

    total = 1
    for d in orig_shape:
        total *= d

    kind = _device_kind()
    dual_tc = "v7" in kind  # two TensorCores share the ("parallel",) grid

    # Native math when f32, or sub-32-bit float on bf16-capable VPUs (v6e/v7x);
    # otherwise upcast to f32 (v5e VPU/EUP have no bf16, ints need float sqrt).
    if jnp.issubdtype(out_dtype, jnp.floating) and (
        jnp.dtype(out_dtype).itemsize >= 4 or "v6" in kind or "v7" in kind
    ):
        compute_dtype = out_dtype
    else:
        compute_dtype = jnp.float32

    # ---- fallbacks: tiny tensors, or no lane-dense factorization of `total` ----
    lanes = next((l for l in _LANE_CANDIDATES if total >= l and total % l == 0), None)
    total_bytes = total * max(
        jnp.dtype(x.dtype).itemsize, jnp.dtype(out_dtype).itemsize
    )
    if lanes is None or total_bytes < min_pallas_bytes:
        xc = x.astype(compute_dtype)
        sc = scale_x.astype(compute_dtype)
        return jnp.sqrt(xc * sc).astype(out_dtype)

    # ---- lane-dense, metadata-only reshape (no padding, no extra HBM copies) ----
    rows = total // lanes
    x2 = x.reshape(rows, lanes)
    s2 = scale_x.reshape(rows, lanes)

    # Sublane packing requirement: 8 rows for 4B dtypes, 16 for 2B, 32 for 1B.
    min_item = min(
        jnp.dtype(x.dtype).itemsize,
        jnp.dtype(scale_x.dtype).itemsize,
        jnp.dtype(out_dtype).itemsize,
    )
    sublane_mult = 32 // min_item

    # ~block_bytes per input tile; big tiles amortize the per-grid-step overhead.
    elems_per_tile = max(1, block_bytes // jnp.dtype(x.dtype).itemsize)
    bm = max(1, elems_per_tile // lanes)

    if dual_tc:
        # Target >= 4 balanced grid steps so both TensorCores get work.
        bm = min(bm, max(sublane_mult, pl.cdiv(rows, 4)))

    if bm < rows:
        bm = max(sublane_mult, (bm // sublane_mult) * sublane_mult)
    bm = min(bm, rows)  # full-extent block is always legal

    grid = (pl.cdiv(rows, bm),)  # ragged last block: OOB lanes are not stored back

    out2 = pl.pallas_call(
        functools.partial(_out_mult_kernel, compute_dtype=compute_dtype),
        out_shape=jax.ShapeDtypeStruct((rows, lanes), out_dtype),
        grid=grid,
        in_specs=[
            pl.BlockSpec((bm, lanes), lambda i: (i, 0)),
            pl.BlockSpec((bm, lanes), lambda i: (i, 0)),
        ],
        out_specs=pl.BlockSpec((bm, lanes), lambda i: (i, 0)),
        compiler_params=pltpu.CompilerParams(
            dimension_semantics=("parallel",)
        ),
    )(x2, s2)

    return out2.reshape(orig_shape)


def reference(x, scale_x):
    return jnp.sqrt(x * scale_x)


if __name__ == "__main__":
    key = jax.random.PRNGKey(0)
    k0, k1, k2, k3, k4, k5 = jax.random.split(key, 6)

    # 1) Small NCHW shape (module-typical), forcing the Pallas path.
    N, C, H, W = 2, 4, 16, 16
    x = jax.random.uniform(k0, (N, C, H, W), minval=0.1, maxval=2.0, dtype=jnp.float32)
    sx = jax.random.uniform(k1, (N, C, H, W), minval=0.1, maxval=2.0, dtype=jnp.float32)
    out = out_mult(x, sx, min_pallas_bytes=0)
    jax.block_until_ready(out)
    assert out.shape == (N, C, H, W)
    assert jnp.allclose(out, reference(x, sx), atol=1e-6, rtol=1e-6)

    # 2) Shape exercising the ragged last block / multi-step grid
    #    (small block_bytes forces >1 grid step, rows % bm != 0).
    xb = jax.random.uniform(k2, (2, 4, 40, 128), minval=0.1, maxval=2.0, dtype=jnp.float32)
    sb = jax.random.uniform(k3, (2, 4, 40, 128), minval=0.1, maxval=2.0, dtype=jnp.float32)
    outb = out_mult(xb, sb, block_bytes=32 * 1024, min_pallas_bytes=0)
    jax.block_until_ready(outb)
    assert jnp.allclose(outb, reference(xb, sb), atol=1e-6, rtol=1e-6)

    # 3) Non-128-divisible element count -> fused XLA fallback path.
    xc = jax.random.uniform(k4, (2, 3, 37, 53), minval=0.1, maxval=2.0, dtype=jnp.float32)
    sc = jax.random.uniform(k5, (2, 3, 37, 53), minval=0.1, maxval=2.0, dtype=jnp.float32)
    outc = out_mult(xc, sc)
    jax.block_until_ready(outc)
    assert jnp.allclose(outc, reference(xc, sc), atol=1e-6, rtol=1e-6)

    print("KERNEL_OK")
</pallas_src>

<mosaic_0001>
module attributes {stable_mosaic.version = 11 : i64} {
  func.func @_out_mult_kernel(%arg0: i32, %arg1: memref<1x2048xf32, #tpu.memory_space<vmem>>, %arg2: memref<1x2048xf32, #tpu.memory_space<vmem>>, %arg3: memref<1x2048xf32, #tpu.memory_space<vmem>>) attributes {dimension_semantics = [#tpu.dimension_semantics<parallel>], iteration_bounds = array<i64: 1>, scalar_prefetch = 0 : i64, scratch_operands = 0 : i64, tpu.core_type = #tpu.core_type<tc>, window_params = [{transform_indices = @transform_0, window_bounds = array<i64: 1, 2048>}, {transform_indices = @transform_1, window_bounds = array<i64: 1, 2048>}, {transform_indices = @transform_2, window_bounds = array<i64: 1, 2048>}]} {
    %c0 = arith.constant 0 : index
    %c0_0 = arith.constant 0 : index
    %0 = vector.load %arg1[%c0, %c0_0] : memref<1x2048xf32, #tpu.memory_space<vmem>>, vector<1x2048xf32>
    %c0_1 = arith.constant 0 : index
    %c0_2 = arith.constant 0 : index
    %1 = vector.load %arg2[%c0_1, %c0_2] : memref<1x2048xf32, #tpu.memory_space<vmem>>, vector<1x2048xf32>
    %2 = arith.mulf %0, %1 : vector<1x2048xf32>
    %3 = math.sqrt %2 : vector<1x2048xf32>
    %c0_3 = arith.constant 0 : index
    %c0_4 = arith.constant 0 : index
    %4 = vector.load %arg3[%c0_3, %c0_4] : memref<1x2048xf32, #tpu.memory_space<vmem>>, vector<1x2048xf32>
    tpu.vector_store %arg3[%c0_3, %c0_4], %3 {strides = array<i32>} : memref<1x2048xf32, #tpu.memory_space<vmem>>, vector<1x2048xf32>,
    return
  }
  func.func @transform_0(%arg0: i32) -> (i32, i32) {
    %c0_i32 = arith.constant 0 : i32
    %c0_i32_0 = arith.constant 0 : i32
    return %arg0, %c0_i32 : i32, i32
  }
  func.func @transform_1(%arg0: i32) -> (i32, i32) {
    %c0_i32 = arith.constant 0 : i32
    %c0_i32_0 = arith.constant 0 : i32
    return %arg0, %c0_i32 : i32, i32
  }
  func.func @transform_2(%arg0: i32) -> (i32, i32) {
    %c0_i32 = arith.constant 0 : i32
    %c0_i32_0 = arith.constant 0 : i32
    return %arg0, %c0_i32 : i32, i32
  }
}

</mosaic_0001>

<bundles_post_ra>
// kernel: out_mult.1
= control target key start
LH: loop header
LB: loop body
LE: loop exit
PB: predicated region body
PF: predicated region fallthrough
CT: control target
= control target key end

     0   :  { %s74_s0 = inlined_call_operand.vmem [shape: f32[1,2048], index: 0, kind: input, shape index: {}]   ;;  %s75_s1 = inlined_call_operand.vmem [shape: f32[1,2048], index: 1, kind: input, shape index: {}]   ;;  %s76_s2 = inlined_call_operand.vmem [shape: f32[1,2048], index: 2, kind: output, shape index: {}]  }
   0x1   :  { %v11_v0 = vld [vmem:[%s74_s0] sm:$0xff]  ;;  %v12_v2 = vld [vmem:[%s74_s0 + $0x8] sm:$0xff] }
   0x2   :  { %v13_v1 = vld [vmem:[%s75_s1] sm:$0xff]  ;;  %v14_v4 = vld [vmem:[%s75_s1 + $0x8] sm:$0xff] }
   0x3   :  { %v15_v3 = vmul.f32 %v13_v1, %v11_v0  ;;  %v16_v5 = vmul.f32 %v14_v4, %v12_v2 }
   0x5   :  { %37 = vrsqrt.f32 %v15_v3  ;;  %vm19_vm0 = vcmp.eq.f32.partialorder %v15_v3, inf  ;;  %v22_v7 = vand.u32 2147483648, %v15_v3  ;;  %vm21_vm1 = vcmp.eq.f32.partialorder %v15_v3, 0.0 }
   0x6   :  { %39 = vrsqrt.f32 %v16_v5  ;;  %vm26_vm2 = vcmp.eq.f32.partialorder %v16_v5, inf  ;;  %v29_v10 = vand.u32 2147483648, %v16_v5  ;;  %vm28_vm3 = vcmp.eq.f32.partialorder %v16_v5, 0.0 }
  0x12   :  { %v38_v6 = vpop.eup %37 }
  0x13   :  { %v40_v8 = vpop.eup %39  ;;  %v18_v9 = vmul.f32 %v38_v6, %v15_v3 }
  0x14   :  { %v25_v11 = vmul.f32 %v40_v8, %v16_v5 }
  0x15   :  { %v20_v12 = vsel %vm19_vm0, %v15_v3, %v18_v9 }
  0x16   :  { %v23_v13 = vsel %vm21_vm1, %v22_v7, %v20_v12  ;;  %v27_v14 = vsel %vm26_vm2, %v16_v5, %v25_v11 }
  0x17   :  { %31 = vst [vmem:[%s76_s2] sm:$0xff] %v23_v13  ;;  %v30_v15 = vsel %vm28_vm3, %v29_v10, %v27_v14 }
  0x18   :  { %32 = vst [vmem:[%s76_s2 + $0x8] sm:$0xff] %v30_v15 }

</bundles_post_ra>
